<compile_context>
chip_gen: v6e
topology: v6e:2x2x1
jax: 0.10.0
libtpu: 0.0.40
codegen_flags: <defaults>
</compile_context>

<pallas_src>
import jax
import jax.numpy as jnp
from jax.experimental import pallas as pl
from jax.experimental.pallas import tpu as pltpu


def softmax_regression_kernel(params_ref, xt_ref, logits_ref, probs_ref):
    # params_ref: (C, 3)  -> [:, 0:1]=W[:,0], [:, 1:2]=W[:,1], [:, 2:3]=bias
    # xt_ref:     (2, TB) -> batch on the lane axis (lane-dense)
    # outputs:    (C, TB) transposed logits / probs
    x0 = xt_ref[0:1, :].astype(jnp.float32)        # (1, TB)
    x1 = xt_ref[1:2, :].astype(jnp.float32)        # (1, TB)
    w0 = params_ref[:, 0:1]                        # (C, 1)
    w1 = params_ref[:, 1:2]                        # (C, 1)
    b = params_ref[:, 2:3]                         # (C, 1)

    # Two VPU broadcast FMAs replace the (B,2)@(2,C) MXU matmul.
    logits = w0 * x0 + (w1 * x1 + b)               # (C, TB), f32

    # Numerically stable softmax over the class (sublane) axis.
    # Exact divide: kernel is memory-bound, approx reciprocal gains nothing
    # and breaks sum(probs)==1 normalization.
    m = jnp.max(logits, axis=0, keepdims=True)     # (1, TB)
    e = jnp.exp(logits - m)                        # EUP
    s = jnp.sum(e, axis=0, keepdims=True)          # (1, TB)
    probs = e / s                                  # exact normalization

    logits_ref[...] = logits.astype(logits_ref.dtype)
    probs_ref[...] = probs.astype(probs_ref.dtype)


def _choose_batch_tile(B, max_tb):
    """Largest useful lane-dense batch tile.

    Small B -> single full-extent tile (block == full array dims is legal).
    Moderate/large B -> multiple-of-128 tile, at least 2 grid steps so the
    "parallel" batch axis can shard across v7x's two TensorCores, capped by
    max_tb (sized for the smallest default scoped VMEM, v5e's 16 MiB).
    """
    if B < 256:
        return B
    half = pl.cdiv(B, 2)
    tb = ((half + 127) // 128) * 128
    return min(tb, max_tb)


def softmax_regression(x, weight, bias, *, max_tb=65536,
                       out_dtype=jnp.float32, transposed_io=False):
    """x: (B, 2) (or (2, B) if transposed_io); weight: (C, 2); bias: (C,).

    Returns (logits, probs). Layout is (B, C) by default (PyTorch semantics);
    with transposed_io=True, x is taken as (2, B) and outputs are (C, B),
    skipping the extra wrapper-side HBM transpose passes.
    """
    if transposed_io:
        x_t = x.astype(jnp.float32)                                # (2, B)
        F_in, B = x_t.shape
    else:
        B, F_in = x.shape
        x_t = x.astype(jnp.float32).T                              # (2, B)
    assert F_in == 2, "SoftmaxRegressionModel uses nn.Linear(2, num_classes)"
    C = weight.shape[0]

    # Fold weight + bias into one small resident parameter block.
    params = jnp.concatenate(
        [weight.astype(jnp.float32), bias.astype(jnp.float32).reshape(C, 1)],
        axis=1,
    )                                                              # (C, 3)

    tb = _choose_batch_tile(B, max_tb)
    grid = (pl.cdiv(B, tb),)

    # Double-buffered VMEM footprint (sublane dims pad to 8): ~192*tb bytes.
    # Default max_tb=65536 -> ~12.5 MiB, inside every generation's default
    # scoped VMEM limit (16 MiB v5e, 32 MiB v6e/v7x), so no vmem_limit_bytes
    # override is needed.
    logits_t, probs_t = pl.pallas_call(
        softmax_regression_kernel,
        out_shape=(
            jax.ShapeDtypeStruct((C, B), out_dtype),  # logits^T
            jax.ShapeDtypeStruct((C, B), out_dtype),  # probs^T
        ),
        grid_spec=pltpu.PrefetchScalarGridSpec(
            num_scalar_prefetch=0,
            grid=grid,
            in_specs=[
                pl.BlockSpec((C, 3), lambda i: (0, 0)),        # params resident
                pl.BlockSpec((F_in, tb), lambda i: (0, i)),    # x tile (lane-dense)
            ],
            out_specs=[
                pl.BlockSpec((C, tb), lambda i: (0, i)),
                pl.BlockSpec((C, tb), lambda i: (0, i)),
            ],
        ),
        compiler_params=pltpu.CompilerParams(
            # Batch tiles are independent -> shard across v7x's 2 TensorCores.
            dimension_semantics=("parallel",),
        ),
    )(params, x_t)

    if transposed_io:
        return logits_t, probs_t
    # Back to the PyTorch (B, C) layout (extra HBM pass; use transposed_io=True
    # in bandwidth-critical pipelines to avoid it).
    return logits_t.T, probs_t.T


if __name__ == "__main__":
    num_classes = 4
    batch = 8
    in_features = 2

    key = jax.random.PRNGKey(0)
    kx, kw, kb = jax.random.split(key, 3)

    # nn.Linear(2, num_classes) shaped parameters.
    weight = jax.random.normal(kw, (num_classes, in_features), dtype=jnp.float32) * 0.5
    bias = jax.random.normal(kb, (num_classes,), dtype=jnp.float32) * 0.1

    x = jax.random.normal(kx, (batch, in_features), dtype=jnp.float32)

    logits, probs = softmax_regression(x, weight, bias)
    logits, probs = jax.block_until_ready((logits, probs))

    # Reference check in plain JAX.
    ref_logits = x @ weight.T + bias
    ref_probs = jax.nn.softmax(ref_logits, axis=1)
    assert logits.shape == (batch, num_classes)
    assert probs.shape == (batch, num_classes)
    assert jnp.allclose(logits, ref_logits, atol=1e-5, rtol=1e-5)
    assert jnp.allclose(probs, ref_probs, atol=1e-5, rtol=1e-5)
    assert jnp.allclose(jnp.sum(probs, axis=1), 1.0, atol=1e-5)

    print("KERNEL_OK")
</pallas_src>

<mosaic_0001>
module attributes {stable_mosaic.version = 11 : i64} {
  func.func @softmax_regression_kernel(%arg0: i32, %arg1: memref<4x3xf32, #tpu.memory_space<vmem>>, %arg2: memref<2x8xf32, #tpu.memory_space<vmem>>, %arg3: memref<4x8xf32, #tpu.memory_space<vmem>>, %arg4: memref<4x8xf32, #tpu.memory_space<vmem>>) attributes {dimension_semantics = [#tpu.dimension_semantics<parallel>], iteration_bounds = array<i64: 1>, scalar_prefetch = 0 : i64, scratch_operands = 0 : i64, tpu.core_type = #tpu.core_type<tc>, window_params = [{pipeline_mode = #tpu.pipeline_mode<synchronous>, transform_indices = @transform_0, window_bounds = array<i64: 4, 3>}, {transform_indices = @transform_1, window_bounds = array<i64: 2, 8>}, {transform_indices = @transform_2, window_bounds = array<i64: 4, 8>}, {transform_indices = @transform_3, window_bounds = array<i64: 4, 8>}]} {
    %c0 = arith.constant 0 : index
    %c0_0 = arith.constant 0 : index
    %0 = vector.load %arg2[%c0, %c0_0] : memref<2x8xf32, #tpu.memory_space<vmem>>, vector<1x8xf32>
    %c1 = arith.constant 1 : index
    %c0_1 = arith.constant 0 : index
    %1 = vector.load %arg2[%c1, %c0_1] : memref<2x8xf32, #tpu.memory_space<vmem>>, vector<1x8xf32>
    %c0_2 = arith.constant 0 : index
    %c0_3 = arith.constant 0 : index
    %2 = vector.load %arg1[%c0_2, %c0_3] : memref<4x3xf32, #tpu.memory_space<vmem>>, vector<4x1xf32>
    %c0_4 = arith.constant 0 : index
    %c1_5 = arith.constant 1 : index
    %3 = vector.load %arg1[%c0_4, %c1_5] : memref<4x3xf32, #tpu.memory_space<vmem>>, vector<4x1xf32>
    %c0_6 = arith.constant 0 : index
    %c2 = arith.constant 2 : index
    %4 = vector.load %arg1[%c0_6, %c2] : memref<4x3xf32, #tpu.memory_space<vmem>>, vector<4x1xf32>
    %5 = vector.broadcast %2 : vector<4x1xf32> to vector<4x8xf32>
    %6 = vector.broadcast %0 : vector<1x8xf32> to vector<4x8xf32>
    %7 = arith.mulf %5, %6 : vector<4x8xf32>
    %8 = vector.broadcast %3 : vector<4x1xf32> to vector<4x8xf32>
    %9 = vector.broadcast %1 : vector<1x8xf32> to vector<4x8xf32>
    %10 = arith.mulf %8, %9 : vector<4x8xf32>
    %11 = vector.broadcast %4 : vector<4x1xf32> to vector<4x8xf32>
    %12 = arith.addf %10, %11 : vector<4x8xf32>
    %13 = arith.addf %7, %12 : vector<4x8xf32>
    %cst = arith.constant dense<0xFF800000> : vector<8xf32>
    %14 = vector.multi_reduction <maximumf>, %13, %cst [0] : vector<4x8xf32> to vector<8xf32>
    %15 = vector.shape_cast %14 : vector<8xf32> to vector<1x8xf32>
    %16 = vector.broadcast %15 : vector<1x8xf32> to vector<4x8xf32>
    %17 = arith.subf %13, %16 : vector<4x8xf32>
    %18 = math.exp %17 : vector<4x8xf32>
    %cst_7 = arith.constant dense<0.000000e+00> : vector<8xf32>
    %19 = vector.multi_reduction <add>, %18, %cst_7 [0] : vector<4x8xf32> to vector<8xf32>
    %20 = vector.shape_cast %19 : vector<8xf32> to vector<1x8xf32>
    %21 = vector.broadcast %20 : vector<1x8xf32> to vector<4x8xf32>
    %22 = arith.divf %18, %21 : vector<4x8xf32>
    %c0_8 = arith.constant 0 : index
    %c0_9 = arith.constant 0 : index
    %23 = vector.load %arg3[%c0_8, %c0_9] : memref<4x8xf32, #tpu.memory_space<vmem>>, vector<4x8xf32>
    tpu.vector_store %arg3[%c0_8, %c0_9], %13 {strides = array<i32>} : memref<4x8xf32, #tpu.memory_space<vmem>>, vector<4x8xf32>,
    %c0_10 = arith.constant 0 : index
    %c0_11 = arith.constant 0 : index
    %24 = vector.load %arg4[%c0_10, %c0_11] : memref<4x8xf32, #tpu.memory_space<vmem>>, vector<4x8xf32>
    tpu.vector_store %arg4[%c0_10, %c0_11], %22 {strides = array<i32>} : memref<4x8xf32, #tpu.memory_space<vmem>>, vector<4x8xf32>,
    return
  }
  func.func @transform_0(%arg0: i32) -> (i32, i32) {
    %c0_i32 = arith.constant 0 : i32
    %c0_i32_0 = arith.constant 0 : i32
    %c0_i32_1 = arith.constant 0 : i32
    return %c0_i32, %c0_i32_0 : i32, i32
  }
  func.func @transform_1(%arg0: i32) -> (i32, i32) {
    %c0_i32 = arith.constant 0 : i32
    %c0_i32_0 = arith.constant 0 : i32
    return %c0_i32, %arg0 : i32, i32
  }
  func.func @transform_2(%arg0: i32) -> (i32, i32) {
    %c0_i32 = arith.constant 0 : i32
    %c0_i32_0 = arith.constant 0 : i32
    return %c0_i32, %arg0 : i32, i32
  }
  func.func @transform_3(%arg0: i32) -> (i32, i32) {
    %c0_i32 = arith.constant 0 : i32
    %c0_i32_0 = arith.constant 0 : i32
    return %c0_i32, %arg0 : i32, i32
  }
}

</mosaic_0001>

<bundles_post_ra>
// kernel: tpu_custom_call.1
= control target key start
LH: loop header
LB: loop body
LE: loop exit
PB: predicated region body
PF: predicated region fallthrough
CT: control target
= control target key end

     0   :  { %9 = vsyncpa [#allocation3], 0  ;;  %s267_s0 = inlined_call_operand.hbm [shape: f32[4,3], index: 0, kind: input, shape index: {}]   ;;  %s268_s1 = inlined_call_operand.hbm [shape: f32[2,8], index: 1, kind: input, shape index: {}]   ;;  %s269_s2 = inlined_call_operand.hbm [shape: f32[4,8], index: 2, kind: output, shape index: {0}]   ;;  %s270_s3 = inlined_call_operand.hbm [shape: f32[4,8], index: 3, kind: output, shape index: {1}]  }
   0x1   :  { %10 = vsyncpa [#allocation6], 0 }
   0x2   :  { %11 = vsyncpa [#allocation4], 0 }
   0x3   :  { %12 = vsyncpa [#allocation9], 0  ;;  %s224_s12 = smov [#allocation2]   ;;  %s225_s14 = smov [#allocation5]  }
   0x4   :  { %s19_s13 = sshll.u32 %s224_s12, 4  ;;  %s29_s15 = sshll.u32 %s225_s14, 4  ;;  %s20_s13 = int_to_ptr.vmem [resolvable:$true] %s19_s13  ;;  %s30_s15 = int_to_ptr.vmem [resolvable:$true] %s29_s15 }
   0x5   :  { %s144_s16 = scalar_lea.vmem %s20_s13, 64  ;;  %p149_p1 = scmp.lt.s32.totalorder %s20_s13, %s20_s13 }
   0x6   :  { %p145_p0 = scmp.ne.s32.totalorder %s20_s13, %s144_s16  ;;  %p150_p2 = scmp.lt.s32.totalorder %s144_s16, %s144_s16 }
   0x8   :  { %p151_p3 = por %p150_p2, %p149_p1 }
   0xa   :  { %p152_p4 = pnand %p151_p3, %p145_p0 }
   0xc   :  { %155 = shalt.err (!%p152_p4)
}
   0xd   :  { %22 = dma.hbm_to_vmem [thread:$0]  %s267_s0, 64, %s20_s13, [#allocation3]  }
   0xe   :  { %s164_s19 = scalar_lea.vmem %s30_s15, 32  ;;  %p169_p6 = scmp.lt.s32.totalorder %s30_s15, %s30_s15 }
   0xf   :  { %p165_p5 = scmp.ne.s32.totalorder %s30_s15, %s164_s19  ;;  %p170_p7 = scmp.lt.s32.totalorder %s164_s19, %s164_s19 }
  0x11   :  { %p171_p8 = por %p170_p7, %p169_p6 }
  0x13   :  { %p172_p9 = pnand %p171_p8, %p165_p5 }
  0x15   :  { %175 = shalt.err (!%p172_p9)
}
  0x16   :  { %32 = dma.hbm_to_vmem [thread:$0]  %s268_s1, 32, %s30_s15, [#allocation6]  }
  0x17   :  { %216 = dma.done.wait [#allocation3], 64  }
  0x18   :  { %217 = vsyncadd [#allocation3], 4294967232 }
  0x19   :  { %218 = dma.done.wait [#allocation6], 32  }
  0x1a   :  { %219 = vsyncadd [#allocation6], 4294967264  ;;  %v226_v0 = vmov 1   ;;  %v227_v1 = vmov 2   ;;  %v41_v2 = vld [vmem:[#allocation2] sm:$0xf] }
  0x1b   :  { %128 = vset.pattern.permute.xlu0 %v226_v0  ;;  %130 = vset.pattern.permute.xlu1 %v227_v1  ;;  %v228_v3 = vmov 0   ;;  %v120_v4 = vld [vmem:[#allocation5 + $0x1] ss:$0 sm:$0xff]  ;;  %v119_v8 = vld [vmem:[#allocation5] ss:$0 sm:$0xff]  ;;  %s229_s0 = smov [#allocation7]  }
  0x1c   :  { %53 = vperm.xlu0 %128, %v41_v2   ;;  %62 = vperm.xlu1 %130, %v41_v2   ;;  %s95_s1 = sshll.u32 %s229_s0, 4  ;;  %vm67_vm0 = vcmask 60416   ;;  %s96_s1 = int_to_ptr.vmem [resolvable:$true] %s95_s1 }
  0x1d   :  { %s176_s22 = scalar_lea.vmem %s96_s1, 64  ;;  %p181_p11 = scmp.lt.s32.totalorder %s96_s1, %s96_s1 }
  0x1e   :  { %p177_p10 = scmp.ne.s32.totalorder %s96_s1, %s176_s22  ;;  %p182_p12 = scmp.lt.s32.totalorder %s176_s22, %s176_s22 }
  0x20   :  { %129 = vset.pattern.permute.xlu0 %v228_v3  ;;  %p183_p13 = por %p182_p12, %p181_p11 }
  0x21   :  { %44 = vperm.xlu0 %129, %v41_v2  }
  0x22   :  { %p184_p0 = pnand %p183_p13, %p177_p10 }
  0x25   :  { %131 = vset.pattern.permute.xlu0 %v227_v1 }
  0x97   :  { %v54_v5 = vpop.permute.xlu0 %53  ;;  %v63_v7 = vpop.permute.xlu1 %62 }
  0x98   :  { %v60_v6 = vmul.f32 %v120_v4, %v54_v5 }
  0x9a   :  { %v65_v10 = vadd.f32 %v63_v7, %v60_v6 }
  0x9c   :  { %v45_v9 = vpop.permute.xlu0 %44 }
  0x9d   :  { %v51_v11 = vmul.f32 %v119_v8, %v45_v9 }
  0x9f   :  { %v66_v12 = vadd.f32 %v65_v10, %v51_v11 }
  0xa1   :  { %v68_v13 = vsel %vm67_vm0, %v66_v12, -inf  ;;  %87 = vst.msk [vmem:[#allocation7] sm:$0xf] %vm67_vm0, %v66_v12 }
  0xa2   :  { %v69_v14 = vrot.slane %v68_v13, 4 }
  0xa3   :  { %187 = shalt.err (!%p184_p0)
}
  0xa4   :  { %98 = dma.vmem_to_hbm [thread:$0]  %s96_s1, 64, %s269_s2, [#allocation4]   ;;  %v70_v15 = vmax.f32 %v68_v13, %v69_v14 }
  0xa5   :  { %s230_s25 = smov [#allocation8]  }
  0xa6   :  { %v71_v16 = vrot.slane %v70_v15, 2  ;;  %s105_s2 = sshll.u32 %s230_s25, 4  ;;  %s106_s2 = int_to_ptr.vmem [resolvable:$true] %s105_s2 }
  0xa7   :  { %s196_s26 = scalar_lea.vmem %s106_s2, 64  ;;  %p201_p2 = scmp.lt.s32.totalorder %s106_s2, %s106_s2 }
  0xa8   :  { %v72_v17 = vmax.f32 %v70_v15, %v71_v16  ;;  %p197_p1 = scmp.ne.s32.totalorder %s106_s2, %s196_s26  ;;  %p202_p3 = scmp.lt.s32.totalorder %s196_s26, %s196_s26 }
  0xaa   :  { %v73_v18 = vrot.slane %v72_v17, 1  ;;  %p203_p4 = por %p202_p3, %p201_p2 }
  0xac   :  { %v74_v19 = vmax.f32 %v72_v17, %v73_v18  ;;  %p204_p5 = pnand %p203_p4, %p197_p1 }
  0xae   :  { %v75_v20 = vsub.f32 %v66_v12, %v74_v19 }
  0xb0   :  { %v76_v21 = vmul.f32 1.442695, %v75_v20 }
  0xb2   :  { %132 = vpow2.f32 %v76_v21 }
  0xbf   :  { %v133_v22 = vpop.eup %132 }
  0xc0   :  { %v78_v23 = vsel %vm67_vm0, %v133_v22, 0.0 }
  0xc1   :  { %v79_v24 = vrot.slane %v78_v23, 4 }
  0xc3   :  { %v80_v25 = vadd.f32 %v79_v24, %v78_v23 }
  0xc5   :  { %v81_v26 = vrot.slane %v80_v25, 2 }
  0xc7   :  { %v82_v27 = vadd.f32 %v81_v26, %v80_v25 }
  0xc9   :  { %v83_v28 = vrot.slane %v82_v27, 1 }
  0xcb   :  { %v84_v29 = vadd.f32 %v83_v28, %v82_v27 }
  0xcd   :  { %134 = vrcp.f32 %v84_v29 }
  0xda   :  { %v135_v30 = vpop.eup %134 }
  0xdb   :  { %v86_v31 = vmul.f32 %v135_v30, %v133_v22 }
  0xdd   :  { %88 = vst.msk [vmem:[#allocation8] sm:$0xf] %vm67_vm0, %v86_v31 }
  0xde   :  { %207 = shalt.err (!%p204_p5)
}
  0xdf   :  { %108 = dma.vmem_to_hbm [thread:$0]  %s106_s2, 64, %s270_s3, [#allocation9]  }
  0xe0   :  { %220 = dma.done.wait [#allocation4], 64  }
  0xe1   :  { %221 = vsyncadd [#allocation4], 4294967232 }
  0xe2   :  { %222 = dma.done.wait [#allocation9], 64  }
  0xe3   :  { %223 = vsyncadd [#allocation9], 4294967232 }
  0xe4   :  { %115 = vsyncpa [#allocation3], 1 }
  0xe5   :  { %116 = vsyncpa [#allocation6], 1 }
  0xe6   :  { %117 = vsyncpa [#allocation4], 1 }
  0xe7   :  { %118 = vsyncpa [#allocation9], 1 }

</bundles_post_ra>
